<compile_context>
chip_gen: v5e
topology: v5e:2x2
jax: 0.10.0
libtpu: 0.0.40
codegen_flags: <defaults>
</compile_context>

<pallas_src>
import functools

import jax
import jax.numpy as jnp
from jax.experimental import pallas as pl
from jax.experimental.pallas import tpu as pltpu  # noqa: F401  (TPU backend)

INPUT_SIZE = 28
INPUT_SHAPE = (1, INPUT_SIZE, INPUT_SIZE)
OUT_FEATURES = INPUT_SHAPE[0] * INPUT_SHAPE[1] * INPUT_SHAPE[2]  # 784
OUT_FEATURES_PADDED = 896  # 7 * 128  -> lane-dense output stores
BN_EPS = 1e-5
LRELU_SLOPE = 0.2
SUBLANE = 8


def _leaky_relu(x):
    return jnp.where(x >= 0, x, LRELU_SLOPE * x)


def _round_up(x, m):
    return ((x + m - 1) // m) * m


# ---------------------------------------------------------------------------
# Fused kernel: the whole generator in one body (everything resident in VMEM)
# ---------------------------------------------------------------------------
def fused_generator_kernel(*refs, n_blocks, n_valid):
    """refs = [z, w0, b0, (w, b, gamma, beta) * n_blocks, w_out, b_out, out].

    Weights are bf16 (in, out) matrices; biases / gamma / beta are f32 rows.
    `n_valid` is the real (unpadded) batch size used for BN statistics.
    """
    idx = 0
    z_ref = refs[idx]; idx += 1
    w0_ref = refs[idx]; idx += 1
    b0_ref = refs[idx]; idx += 1
    block_refs = []
    for _ in range(n_blocks):
        block_refs.append(refs[idx:idx + 4])
        idx += 4
    w_out_ref = refs[idx]; idx += 1
    b_out_ref = refs[idx]; idx += 1
    out_ref = refs[idx]

    bpad = z_ref.shape[0]
    # Row-validity mask so padded batch rows never pollute BN statistics.
    row_ids = jax.lax.broadcasted_iota(jnp.int32, (bpad, 1), 0)
    mask = (row_ids < n_valid).astype(jnp.float32)
    inv_n = 1.0 / float(n_valid)

    # ---- layer 0: Linear -> LeakyReLU --------------------------------------
    x = jnp.dot(z_ref[...].astype(jnp.bfloat16), w0_ref[...],
                preferred_element_type=jnp.float32) + b0_ref[...]
    x = _leaky_relu(x)

    # ---- basic blocks: Linear -> BatchNorm1d (batch stats) -> LeakyReLU ----
    for (w_ref, b_ref, g_ref, beta_ref) in block_refs:
        z = jnp.dot(x.astype(jnp.bfloat16), w_ref[...],
                    preferred_element_type=jnp.float32) + b_ref[...]
        zm = z * mask                                  # zero out padded rows
        mean = jnp.sum(zm, axis=0, keepdims=True) * inv_n
        mean_sq = jnp.sum(zm * z, axis=0, keepdims=True) * inv_n
        var = jnp.maximum(mean_sq - mean * mean, 0.0)  # single-pass, biased
        y = (z - mean) * jax.lax.rsqrt(var + BN_EPS) * g_ref[...] + beta_ref[...]
        x = _leaky_relu(y)

    # ---- output layer: Linear -> Tanh (lane-dense padded to 896 cols) ------
    y = jnp.dot(x.astype(jnp.bfloat16), w_out_ref[...],
                preferred_element_type=jnp.float32) + b_out_ref[...]
    out_ref[...] = jnp.tanh(y).astype(out_ref.dtype)


# ---------------------------------------------------------------------------
# Wrapper: one gridless pallas_call, full-array blocks (all tiny, fit in VMEM)
# ---------------------------------------------------------------------------
def _spec(shape):
    return pl.BlockSpec(shape, lambda: tuple(0 for _ in shape))


def generator_forward(z, params):
    batch = z.shape[0]
    bpad = max(SUBLANE, _round_up(batch, SUBLANE))     # full f32 sublane tile
    z_p = jnp.zeros((bpad, z.shape[1]), jnp.float32).at[:batch].set(z)

    inputs = [z_p, params["w0"], params["b0"]]
    for blk in params["blocks"]:
        inputs.extend(blk)
    inputs.extend([params["w_out"], params["b_out"]])

    kernel = functools.partial(
        fused_generator_kernel,
        n_blocks=len(params["blocks"]),
        n_valid=batch,
    )
    out_padded = pl.pallas_call(
        kernel,
        out_shape=jax.ShapeDtypeStruct((bpad, OUT_FEATURES_PADDED), jnp.float32),
        in_specs=[_spec(a.shape) for a in inputs],
        out_specs=_spec((bpad, OUT_FEATURES_PADDED)),
    )(*inputs)
    # TODO(synk): if batch is ever scaled up, add a batch grid marked
    # "parallel" (second TC on v7x) with a masked cross-tile BN reduction.

    out = out_padded[:batch, :OUT_FEATURES]            # drop pad rows/cols
    return out.reshape(batch, *INPUT_SHAPE)


# ---------------------------------------------------------------------------
# Parameter construction (deterministic, PyTorch-default-style init)
# ---------------------------------------------------------------------------
def _init_linear(key, in_dim, out_dim, pad_out=None):
    """PyTorch nn.Linear default init U(-1/sqrt(in), 1/sqrt(in)).

    Weight returned already transposed to (in, out) for x @ W, stored bf16
    (MXU input); bias stays f32 (added after the f32-accumulated matmul).
    Optional zero-padding of the output dim for lane-dense stores."""
    kw, kb = jax.random.split(key)
    bound = 1.0 / jnp.sqrt(jnp.float32(in_dim))
    w = jax.random.uniform(kw, (in_dim, out_dim), jnp.float32, -bound, bound)
    b = jax.random.uniform(kb, (1, out_dim), jnp.float32, -bound, bound)
    if pad_out is not None and pad_out > out_dim:
        w = jnp.pad(w, ((0, 0), (0, pad_out - out_dim)))
        b = jnp.pad(b, ((0, 0), (0, pad_out - out_dim)))
    return w.astype(jnp.bfloat16), b


def init_generator_params(key, latent_dim, dim_list):
    keys = jax.random.split(key, len(dim_list) + 1)
    params = {}
    # first Linear(latent_dim, dim_list[0]) + LeakyReLU
    params["w0"], params["b0"] = _init_linear(keys[0], latent_dim, dim_list[0])
    # basic blocks: Linear -> BN -> LeakyReLU
    blocks = []
    for i, (in_ch, out_ch) in enumerate(zip(dim_list[:-1], dim_list[1:])):
        w, b = _init_linear(keys[1 + i], in_ch, out_ch)
        gamma = jnp.ones((1, out_ch), jnp.float32)   # BN weight init
        beta = jnp.zeros((1, out_ch), jnp.float32)   # BN bias init
        blocks.append((w, b, gamma, beta))
    params["blocks"] = blocks
    # output Linear(dim_list[-1], 784) + Tanh, zero-padded to 896 columns
    params["w_out"], params["b_out"] = _init_linear(
        keys[-1], dim_list[-1], OUT_FEATURES, pad_out=OUT_FEATURES_PADDED)
    return params


# ---------------------------------------------------------------------------
if __name__ == "__main__":
    latent_dim = 32
    dim_list = [64, 128]
    batch = 2

    key = jax.random.PRNGKey(0)
    k_params, k_z = jax.random.split(key)

    params = init_generator_params(k_params, latent_dim, dim_list)
    z = jax.random.normal(k_z, (batch, latent_dim), jnp.float32)

    out = jax.jit(generator_forward)(z, params)
    out = jax.block_until_ready(out)

    assert out.shape == (batch, *INPUT_SHAPE), out.shape
    assert out.dtype == jnp.float32
    # tanh output range sanity check
    assert bool(jnp.all(jnp.abs(out) <= 1.0 + 1e-6))

    print("KERNEL_OK")
</pallas_src>

<mosaic_0001>
module attributes {stable_mosaic.version = 11 : i64} {
  func.func @fused_generator_kernel(%arg0: memref<8x32xf32, #tpu.memory_space<vmem>>, %arg1: memref<32x64xbf16, #tpu.memory_space<vmem>>, %arg2: memref<1x64xf32, #tpu.memory_space<vmem>>, %arg3: memref<64x128xbf16, #tpu.memory_space<vmem>>, %arg4: memref<1x128xf32, #tpu.memory_space<vmem>>, %arg5: memref<1x128xf32, #tpu.memory_space<vmem>>, %arg6: memref<1x128xf32, #tpu.memory_space<vmem>>, %arg7: memref<128x896xbf16, #tpu.memory_space<vmem>>, %arg8: memref<1x896xf32, #tpu.memory_space<vmem>>, %arg9: memref<8x896xf32, #tpu.memory_space<vmem>>) attributes {dimension_semantics = [], scalar_prefetch = 0 : i64, scratch_operands = 0 : i64, tpu.core_type = #tpu.core_type<tc>} {
    %0 = tpu.iota {dimensions = array<i32: 0>} : vector<8x1xi32>
    %c2_i32 = arith.constant 2 : i32
    %1 = vector.broadcast %c2_i32 : i32 to vector<8x1xi32>
    %2 = arith.cmpi slt, %0, %1 : vector<8x1xi32>
    %3 = arith.extui %2 : vector<8x1xi1> to vector<8x1xi32>
    %4 = arith.sitofp %3 : vector<8x1xi32> to vector<8x1xf32>
    %c0 = arith.constant 0 : index
    %c0_0 = arith.constant 0 : index
    %5 = vector.load %arg0[%c0, %c0_0] : memref<8x32xf32, #tpu.memory_space<vmem>>, vector<8x32xf32>
    %6 = arith.truncf %5 : vector<8x32xf32> to vector<8x32xbf16>
    %c0_1 = arith.constant 0 : index
    %c0_2 = arith.constant 0 : index
    %7 = vector.load %arg1[%c0_1, %c0_2] : memref<32x64xbf16, #tpu.memory_space<vmem>>, vector<32x64xbf16>
    %cst = arith.constant dense<0.000000e+00> : vector<8x64xf32>
    %8 = tpu.matmul %6, %7, %cst {dimension_numbers = #tpu.dot_dimension_numbers<[1], [0], [0], [1], [0, 0, 1, 1], [], []>} : vector<8x32xbf16>, vector<32x64xbf16>, vector<8x64xf32> -> vector<8x64xf32>
    %c0_3 = arith.constant 0 : index
    %c0_4 = arith.constant 0 : index
    %9 = vector.load %arg2[%c0_3, %c0_4] : memref<1x64xf32, #tpu.memory_space<vmem>>, vector<1x64xf32>
    %10 = vector.broadcast %9 : vector<1x64xf32> to vector<8x64xf32>
    %11 = arith.addf %8, %10 : vector<8x64xf32>
    %cst_5 = arith.constant 0.000000e+00 : f32
    %12 = vector.broadcast %cst_5 : f32 to vector<8x64xf32>
    %13 = arith.cmpf oge, %11, %12 : vector<8x64xf32>
    %cst_6 = arith.constant 2.000000e-01 : f32
    %14 = vector.broadcast %cst_6 : f32 to vector<8x64xf32>
    %15 = arith.mulf %14, %11 : vector<8x64xf32>
    %16 = arith.select %13, %11, %15 : vector<8x64xi1>, vector<8x64xf32>
    %17 = arith.truncf %16 : vector<8x64xf32> to vector<8x64xbf16>
    %c0_7 = arith.constant 0 : index
    %c0_8 = arith.constant 0 : index
    %18 = vector.load %arg3[%c0_7, %c0_8] : memref<64x128xbf16, #tpu.memory_space<vmem>>, vector<64x128xbf16>
    %cst_9 = arith.constant dense<0.000000e+00> : vector<8x128xf32>
    %19 = tpu.matmul %17, %18, %cst_9 {dimension_numbers = #tpu.dot_dimension_numbers<[1], [0], [0], [1], [0, 0, 1, 1], [], []>} : vector<8x64xbf16>, vector<64x128xbf16>, vector<8x128xf32> -> vector<8x128xf32>
    %c0_10 = arith.constant 0 : index
    %c0_11 = arith.constant 0 : index
    %20 = vector.load %arg4[%c0_10, %c0_11] : memref<1x128xf32, #tpu.memory_space<vmem>>, vector<1x128xf32>
    %21 = vector.broadcast %20 : vector<1x128xf32> to vector<8x128xf32>
    %22 = arith.addf %19, %21 : vector<8x128xf32>
    %23 = vector.broadcast %4 : vector<8x1xf32> to vector<8x128xf32>
    %24 = arith.mulf %22, %23 : vector<8x128xf32>
    %cst_12 = arith.constant dense<0.000000e+00> : vector<128xf32>
    %25 = vector.multi_reduction <add>, %24, %cst_12 [0] : vector<8x128xf32> to vector<128xf32>
    %26 = vector.shape_cast %25 : vector<128xf32> to vector<1x128xf32>
    %cst_13 = arith.constant 5.000000e-01 : f32
    %27 = vector.broadcast %cst_13 : f32 to vector<1x128xf32>
    %28 = arith.mulf %26, %27 : vector<1x128xf32>
    %29 = arith.mulf %24, %22 : vector<8x128xf32>
    %cst_14 = arith.constant dense<0.000000e+00> : vector<128xf32>
    %30 = vector.multi_reduction <add>, %29, %cst_14 [0] : vector<8x128xf32> to vector<128xf32>
    %31 = vector.shape_cast %30 : vector<128xf32> to vector<1x128xf32>
    %cst_15 = arith.constant 5.000000e-01 : f32
    %32 = vector.broadcast %cst_15 : f32 to vector<1x128xf32>
    %33 = arith.mulf %31, %32 : vector<1x128xf32>
    %34 = arith.mulf %28, %28 : vector<1x128xf32>
    %35 = arith.subf %33, %34 : vector<1x128xf32>
    %cst_16 = arith.constant 0.000000e+00 : f32
    %36 = vector.broadcast %cst_16 : f32 to vector<1x128xf32>
    %37 = arith.maximumf %35, %36 : vector<1x128xf32>
    %38 = vector.broadcast %28 : vector<1x128xf32> to vector<8x128xf32>
    %39 = arith.subf %22, %38 : vector<8x128xf32>
    %cst_17 = arith.constant 9.99999974E-6 : f32
    %40 = vector.broadcast %cst_17 : f32 to vector<1x128xf32>
    %41 = arith.addf %37, %40 : vector<1x128xf32>
    %42 = math.rsqrt %41 : vector<1x128xf32>
    %43 = vector.broadcast %42 : vector<1x128xf32> to vector<8x128xf32>
    %44 = arith.mulf %39, %43 : vector<8x128xf32>
    %c0_18 = arith.constant 0 : index
    %c0_19 = arith.constant 0 : index
    %45 = vector.load %arg5[%c0_18, %c0_19] : memref<1x128xf32, #tpu.memory_space<vmem>>, vector<1x128xf32>
    %46 = vector.broadcast %45 : vector<1x128xf32> to vector<8x128xf32>
    %47 = arith.mulf %44, %46 : vector<8x128xf32>
    %c0_20 = arith.constant 0 : index
    %c0_21 = arith.constant 0 : index
    %48 = vector.load %arg6[%c0_20, %c0_21] : memref<1x128xf32, #tpu.memory_space<vmem>>, vector<1x128xf32>
    %49 = vector.broadcast %48 : vector<1x128xf32> to vector<8x128xf32>
    %50 = arith.addf %47, %49 : vector<8x128xf32>
    %cst_22 = arith.constant 0.000000e+00 : f32
    %51 = vector.broadcast %cst_22 : f32 to vector<8x128xf32>
    %52 = arith.cmpf oge, %50, %51 : vector<8x128xf32>
    %cst_23 = arith.constant 2.000000e-01 : f32
    %53 = vector.broadcast %cst_23 : f32 to vector<8x128xf32>
    %54 = arith.mulf %53, %50 : vector<8x128xf32>
    %55 = arith.select %52, %50, %54 : vector<8x128xi1>, vector<8x128xf32>
    %56 = arith.truncf %55 : vector<8x128xf32> to vector<8x128xbf16>
    %c0_24 = arith.constant 0 : index
    %c0_25 = arith.constant 0 : index
    %57 = vector.load %arg7[%c0_24, %c0_25] : memref<128x896xbf16, #tpu.memory_space<vmem>>, vector<128x896xbf16>
    %cst_26 = arith.constant dense<0.000000e+00> : vector<8x896xf32>
    %58 = tpu.matmul %56, %57, %cst_26 {dimension_numbers = #tpu.dot_dimension_numbers<[1], [0], [0], [1], [0, 0, 1, 1], [], []>} : vector<8x128xbf16>, vector<128x896xbf16>, vector<8x896xf32> -> vector<8x896xf32>
    %c0_27 = arith.constant 0 : index
    %c0_28 = arith.constant 0 : index
    %59 = vector.load %arg8[%c0_27, %c0_28] : memref<1x896xf32, #tpu.memory_space<vmem>>, vector<1x896xf32>
    %60 = vector.broadcast %59 : vector<1x896xf32> to vector<8x896xf32>
    %61 = arith.addf %58, %60 : vector<8x896xf32>
    %62 = math.tanh %61 : vector<8x896xf32>
    %c0_29 = arith.constant 0 : index
    %c0_30 = arith.constant 0 : index
    %63 = vector.load %arg9[%c0_29, %c0_30] : memref<8x896xf32, #tpu.memory_space<vmem>>, vector<8x896xf32>
    tpu.vector_store %arg9[%c0_29, %c0_30], %62 {strides = array<i32>} : memref<8x896xf32, #tpu.memory_space<vmem>>, vector<8x896xf32>,
    return
  }
}

</mosaic_0001>

<bundles_post_ra>
// kernel: generator_forward.1
= control target key start
LH: loop header
LB: loop body
LE: loop exit
PB: predicated region body
PF: predicated region fallthrough
CT: control target
= control target key end

     0   :  { %14 = vsyncpa [#allocation3], 0  ;;  %s1366_s0 = inlined_call_operand.vmem [shape: f32[8,32], index: 0, kind: input, shape index: {}]   ;;  %s1367_s1 = inlined_call_operand.vmem [shape: bf16[32,64], index: 1, kind: input, shape index: {}]   ;;  %s1368_s2 = inlined_call_operand.vmem [shape: f32[1,64], index: 2, kind: input, shape index: {}]   ;;  %s1369_s3 = inlined_call_operand.hbm [shape: bf16[64,128], index: 3, kind: input, shape index: {}]   ;;  %s1370_s4 = inlined_call_operand.hbm [shape: f32[1,128], index: 4, kind: input, shape index: {}]   ;;  %s1371_s5 = inlined_call_operand.hbm [shape: f32[1,128], index: 5, kind: input, shape index: {}]   ;;  %s1372_s6 = inlined_call_operand.hbm [shape: f32[1,128], index: 6, kind: input, shape index: {}]   ;;  %s1373_s7 = inlined_call_operand.hbm [shape: bf16[128,896], index: 7, kind: input, shape index: {}]   ;;  %s1374_s8 = inlined_call_operand.hbm [shape: f32[1,896], index: 8, kind: input, shape index: {}]   ;;  %s1375_s9 = inlined_call_operand.vmem [shape: f32[8,896], index: 9, kind: output, shape index: {}]  }
   0x1   :  { %15 = vsyncpa [#allocation5], 0 }
   0x2   :  { %16 = vsyncpa [#allocation8], 0  ;;  %s42_s11 = sshll.u32 %s1370_s4, 4  ;;  %s43_s11 = int_to_ptr.hbm [resolvable:$true] %s42_s11 }
   0x3   :  { %17 = vsyncpa [#allocation11], 0  ;;  %s1243_s12 = smov [#allocation4]   ;;  %s64_s16 = sshll.u32 %s1372_s6, 4  ;;  %s65_s16 = int_to_ptr.hbm [resolvable:$true] %s64_s16 }
   0x4   :  { %s44_s13 = sshll.u32 %s1243_s12, 4  ;;  %s1244_s17 = smov [#allocation7]   ;;  %s45_s13 = int_to_ptr.vmem [resolvable:$true] %s44_s13 }
   0x5   :  { %47 = dma.hbm_to_vmem [thread:$0]  %s43_s11, 16, %s45_s13, [#allocation5]  }
   0x6   :  { %s66_s18 = sshll.u32 %s1244_s17, 4  ;;  %s28_s21 = sshll.u32 %s1369_s3, 4  ;;  %s67_s18 = int_to_ptr.vmem [resolvable:$true] %s66_s18  ;;  %s29_s21 = int_to_ptr.hbm [resolvable:$true] %s28_s21 }
   0x7   :  { %69 = dma.hbm_to_vmem [thread:$0]  %s65_s16, 16, %s67_s18, [#allocation8]  }
   0x8   :  { %s1245_s4 = smov [#allocation2]   ;;  %s53_s25 = sshll.u32 %s1371_s5, 4  ;;  %s54_s25 = int_to_ptr.hbm [resolvable:$true] %s53_s25 }
   0x9   :  { %s30_s22 = sshll.u32 %s1245_s4, 4  ;;  %s1246_s26 = smov 64   ;;  %s31_s22 = int_to_ptr.vmem [resolvable:$true] %s30_s22 }
   0xa   :  { %s1247_s6 = smov 4   ;;  %s1248_s27 = smov [#allocation6]  }
   0xb   :  { %36 = dma.hbm_to_vmem [thread:$0]  %s29_s21, 512, %s31_s22, [#allocation3], %s1246_s26, %s1246_s26, %s1247_s6  }
   0xc   :  { %s55_s28 = sshll.u32 %s1248_s27, 4  ;;  %s74_s3 = sshll.u32 %s1373_s7, 4  ;;  %s56_s28 = int_to_ptr.vmem [resolvable:$true] %s55_s28  ;;  %s75_s3 = int_to_ptr.hbm [resolvable:$true] %s74_s3 }
   0xd   :  { %58 = dma.hbm_to_vmem [thread:$0]  %s54_s25, 16, %s56_s28, [#allocation5]  }
   0xe   :  { %s1249_s10 = smov [#allocation9]   ;;  %s88_s5 = sshll.u32 %s1374_s8, 4  ;;  %s89_s5 = int_to_ptr.hbm [resolvable:$true] %s88_s5 }
   0xf   :  { %s76_s11 = sshll.u32 %s1249_s10, 4  ;;  %s1250_s14 = smov 448   ;;  %s77_s11 = int_to_ptr.vmem [resolvable:$true] %s76_s11 }
  0x10   :  { %s1251_s15 = smov 28   ;;  %s1252_s16 = smov [#allocation10]  }
  0x11   :  { %82 = dma.hbm_to_vmem [thread:$0]  %s75_s3, 7168, %s77_s11, [#allocation8], %s1250_s14, %s1250_s14, %s1251_s15  }
  0x12   :  { %s90_s17 = sshll.u32 %s1252_s16, 4  ;;  %s91_s17 = int_to_ptr.vmem [resolvable:$true] %s90_s17 }
  0x13   :  { %93 = dma.hbm_to_vmem [thread:$0]  %s89_s5, 112, %s91_s17, [#allocation11]  }
  0x14   :  { %1235 = dma.done.wait [#allocation3], 512  }
  0x15   :  { %1236 = vsyncadd [#allocation3], 4294966784 }
  0x16   :  { %1237 = dma.done.wait [#allocation5], 32  }
  0x17   :  { %1238 = vsyncadd [#allocation5], 4294967264 }
  0x18   :  { %1239 = dma.done.wait [#allocation8], 7184  }
  0x19   :  { %1240 = vsyncadd [#allocation8], 4294960112 }
  0x1a   :  { %1241 = dma.done.wait [#allocation11], 112  }
  0x1b   :  { %1242 = vsyncadd [#allocation11], 4294967184  ;;  %v999_v0 = vld [vmem:[%s1367_s1 + $0x8] sm:$0xff]  ;;  %v998_v1 = vld [vmem:[%s1367_s1] sm:$0xff]  ;;  %vm146_vm0 = vcmask 261120   ;;  %vm203_vm2 = vcmask 523264   ;;  %v119_v42 = vlaneseq }
  0x1c   :  { %156 = vmatpush.bf16.msra.mxu1 %v999_v0  ;;  %v124_v2 = vld [vmem:[%s1366_s0] sm:$0xff]  ;;  %v1003_v3 = vld [vmem:[#allocation2 + $0x18] sm:$0xff]  ;;  %v1002_v5 = vld [vmem:[#allocation2 + $0x10] sm:$0xff] }
  0x1d   :  { %v125_v4 = vpack.c.bf16 %v124_v2, %v124_v2  ;;  %v1001_v6 = vld [vmem:[#allocation2 + $0x8] sm:$0xff]  ;;  %v1000_v7 = vld [vmem:[#allocation2] sm:$0xff]  ;;  %v1053_v17 = vld [vmem:[#allocation9 + $0x18c] sm:$0xf]  ;;  %v120_v54 = vshrl.u32 %v119_v42, 7 }
  0x1e   :  { %v1071_v8 = vld [vmem:[%s1368_s2] ss:$0 sm:$0xff]  ;;  %v972_v15 = vld [vmem:[#allocation9 + $0x188] sm:$0xf]  ;;  %v1056_v16 = vld [vmem:[#allocation9 + $0x1a0] sm:$0xf0] }
  0x1f   :  { %v973_v18 = vor.u32 %v1056_v16, %v972_v15  ;;  %v974_v19 = vld [vmem:[#allocation9 + $0x1a4] sm:$0xf0]  ;;  %v980_v20 = vld [vmem:[#allocation9 + $0x190] sm:$0xf]  ;;  %v1057_v21 = vld [vmem:[#allocation9 + $0x1a8] sm:$0xf0] }
  0x20   :  { %157 = vmatpush.bf16.msra.mxu1 %v998_v1  ;;  %v977_v22 = vor.u32 %v1053_v17, %v974_v19  ;;  %v981_v23 = vor.u32 %v1057_v21, %v980_v20  ;;  %v944_v24 = vld [vmem:[#allocation9 + $0x150] sm:$0xf]  ;;  %v1049_v25 = vld [vmem:[#allocation9 + $0x168] sm:$0xf0]  ;;  %v1046_v26 = vld [vmem:[#allocation9 + $0x154] sm:$0xf] }
  0x21   :  { %634 = vmatpush.bf16.msra.mxu2 %v973_v18  ;;  %v945_v27 = vor.u32 %v1049_v25, %v944_v24  ;;  %v946_v28 = vld [vmem:[#allocation9 + $0x16c] sm:$0xf0]  ;;  %v952_v29 = vld [vmem:[#allocation9 + $0x158] sm:$0xf]  ;;  %v1050_v30 = vld [vmem:[#allocation9 + $0x170] sm:$0xf0] }
  0x22   :  { %647 = vmatpush.bf16.msra.mxu3 %v977_v22  ;;  %660 = vmatpush.bf16.msra.mxu0 %v981_v23  ;;  %v949_v31 = vor.u32 %v1046_v26, %v946_v28  ;;  %v953_v32 = vor.u32 %v1050_v30, %v952_v29  ;;  %v916_v33 = vld [vmem:[#allocation9 + $0x118] sm:$0xf]  ;;  %v1042_v34 = vld [vmem:[#allocation9 + $0x130] sm:$0xf0]  ;;  %v1039_v35 = vld [vmem:[#allocation9 + $0x11c] sm:$0xf] }
  0x23   :  { %756 = vmatmul.msk.bf16.vlgmr.msra.gmra.mxu1 %vm146_vm0, %v125_v4  ;;  %v917_v36 = vor.u32 %v1042_v34, %v916_v33  ;;  %v918_v37 = vld [vmem:[#allocation9 + $0x134] sm:$0xf0]  ;;  %v924_v38 = vld [vmem:[#allocation9 + $0x120] sm:$0xf]  ;;  %v1043_v39 = vld [vmem:[#allocation9 + $0x138] sm:$0xf0] }
  0x24   :  { %211 = vmatpush.bf16.msrb.mxu1 %v1003_v3  ;;  %v921_v40 = vor.u32 %v1039_v35, %v918_v37  ;;  %v925_v41 = vor.u32 %v1043_v39, %v924_v38  ;;  %v888_v43 = vld [vmem:[#allocation9 + $0xe0] sm:$0xf]  ;;  %v1035_v44 = vld [vmem:[#allocation9 + $0xf8] sm:$0xf0]  ;;  %v1032_v45 = vld [vmem:[#allocation9 + $0xe4] sm:$0xf] }
  0x25   :  { %635 = vmatpush.bf16.msra.mxu2 %v945_v27  ;;  %v889_v46 = vor.u32 %v1035_v44, %v888_v43  ;;  %v890_v47 = vld [vmem:[#allocation9 + $0xfc] sm:$0xf0]  ;;  %v896_v48 = vld [vmem:[#allocation9 + $0xe8] sm:$0xf]  ;;  %v1036_v49 = vld [vmem:[#allocation9 + $0x100] sm:$0xf0] }
  0x26   :  { %648 = vmatpush.bf16.msra.mxu3 %v949_v31  ;;  %661 = vmatpush.bf16.msra.mxu0 %v953_v32  ;;  %v893_v50 = vor.u32 %v1032_v45, %v890_v47  ;;  %v897_v51 = vor.u32 %v1036_v49, %v896_v48  ;;  %v1054_v52 = vld [vmem:[#allocation9 + $0x194] sm:$0xf]  ;;  %v982_v53 = vld [vmem:[#allocation9 + $0x1ac] sm:$0xf0]  ;;  %v860_v56 = vld [vmem:[#allocation9 + $0xa8] sm:$0xf] }
  0x27   :  { %v985_v55 = vor.u32 %v1054_v52, %v982_v53  ;;  %v1028_v57 = vld [vmem:[#allocation9 + $0xc0] sm:$0xf0]  ;;  %v1025_v58 = vld [vmem:[#allocation9 + $0xac] sm:$0xf]  ;;  %v862_v60 = vld [vmem:[#allocation9 + $0xc4] sm:$0xf0] }
  0x28   :  { %212 = vmatpush.bf16.msrb.mxu1 %v1002_v5  ;;  %v861_v59 = vor.u32 %v1028_v57, %v860_v56  ;;  %v868_v61 = vld [vmem:[#allocation9 + $0xb0] sm:$0xf]  ;;  %v1029_v62 = vld [vmem:[#allocation9 + $0xc8] sm:$0xf0]  ;;  %v865_v63 = vor.u32 %v1025_v58, %v862_v60  ;;  %v1047_v1 = vld [vmem:[#allocation9 + $0x15c] sm:$0xf] }
  0x29   :  { %636 = vmatpush.bf16.msra.mxu2 %v917_v36  ;;  %v869_v0 = vor.u32 %v1029_v62, %v868_v61  ;;  %v954_v2 = vld [vmem:[#allocation9 + $0x174] sm:$0xf0]  ;;  %vm121_vm3 = vcmp.lt.s32.totalorder %v120_v54, 2  ;;  %v832_v5 = vld [vmem:[#allocation9 + $0x70] sm:$0xf]  ;;  %v1253_v16 = vmov 0.0  }
  0x2a   :  { %649 = vmatpush.bf16.msra.mxu3 %v921_v40  ;;  %662 = vmatpush.bf16.msra.mxu0 %v925_v41  ;;  %v1072_v3 = vld [vmem:[#allocation4] ss:$0 sm:$0xff]  ;;  %v957_v4 = vor.u32 %v1047_v1, %v954_v2  ;;  %v926_v15 = vld [vmem:[#allocation9 + $0x13c] sm:$0xf0]  ;;  %v747_v17 = vsel %vm121_vm3, 1.0, %v1253_v16 }
  0x2b   :  { %v804_v21 = vld [vmem:[#allocation9 + $0x38] sm:$0xf]  ;;  %v1014_v22 = vld [vmem:[#allocation9 + $0x50] sm:$0xf0]  ;;  %v1011_v23 = vld [vmem:[#allocation9 + $0x3c] sm:$0xf] }
  0x2c   :  { %213 = vmatpush.bf16.msrb.mxu1 %v1001_v6  ;;  %v1021_v6 = vld [vmem:[#allocation9 + $0x88] sm:$0xf0]  ;;  %v805_v24 = vor.u32 %v1014_v22, %v804_v21  ;;  %v806_v25 = vld [vmem:[#allocation9 + $0x54] sm:$0xf0]  ;;  %v812_v26 = vld [vmem:[#allocation9 + $0x40] sm:$0xf] }
  0x2d   :  { %637 = vmatpush.bf16.msra.mxu2 %v889_v46  ;;  %v1015_v27 = vld [vmem:[#allocation9 + $0x58] sm:$0xf0]  ;;  %v809_v29 = vor.u32 %v1011_v23, %v806_v25  ;;  %v1033_v31 = vld [vmem:[#allocation9 + $0xec] sm:$0xf]  ;;  %v898_v32 = vld [vmem:[#allocation9 + $0x104] sm:$0xf0] }
  0x2e   :  { %650 = vmatpush.bf16.msra.mxu3 %v893_v50  ;;  %663 = vmatpush.bf16.msra.mxu0 %v897_v51  ;;  %v813_v30 = vor.u32 %v1015_v27, %v812_v26  ;;  %v901_v33 = vor.u32 %v1033_v31, %v898_v32  ;;  %v776_v36 = vld [vmem:[#allocation9] sm:$0xf]  ;;  %v1007_v37 = vld [vmem:[#allocation9 + $0x18] sm:$0xf0]  ;;  %v1004_v39 = vld [vmem:[#allocation9 + $0x4] sm:$0xf] }
  0x2f   :  { %v777_v38 = vor.u32 %v1007_v37, %v776_v36  ;;  %v778_v40 = vld [vmem:[#allocation9 + $0x1c] sm:$0xf0]  ;;  %v784_v41 = vld [vmem:[#allocation9 + $0x8] sm:$0xf]  ;;  %v1008_v45 = vld [vmem:[#allocation9 + $0x20] sm:$0xf0] }
  0x30   :  { %214 = vmatpush.bf16.msrb.mxu1 %v1000_v7  ;;  %v1018_v7 = vld [vmem:[#allocation9 + $0x74] sm:$0xf]  ;;  %v781_v44 = vor.u32 %v1004_v39, %v778_v40  ;;  %v785_v48 = vor.u32 %v1008_v45, %v784_v41  ;;  %v870_v49 = vld [vmem:[#allocation9 + $0xcc] sm:$0xf0]  ;;  %v988_v50 = vld [vmem:[#allocation9 + $0x198] sm:$0xf] }
  0x31   :  { %638 = vmatpush.bf16.msra.mxu2 %v861_v59  ;;  %v1026_v46 = vld [vmem:[#allocation9 + $0xb4] sm:$0xf]  ;;  %v1055_v56 = vld [vmem:[#allocation9 + $0x19c] sm:$0xf]  ;;  %v990_v57 = vld [vmem:[#allocation9 + $0x1b4] sm:$0xf0] }
  0x32   :  { %651 = vmatpush.bf16.msra.mxu3 %v865_v63  ;;  %664 = vmatpush.bf16.msra.mxu0 %v869_v0  ;;  %v1058_v51 = vld [vmem:[#allocation9 + $0x1b0] sm:$0xf0]  ;;  %v873_v54 = vor.u32 %v1026_v46, %v870_v49  ;;  %v993_v58 = vor.u32 %v1055_v56, %v990_v57  ;;  %v996_v59 = vld [vmem:[#allocation9 + $0x1a0] sm:$0xf]  ;;  %v1059_v60 = vld [vmem:[#allocation9 + $0x1b8] sm:$0xf0] }
  0x33   :  { %v1019_v61 = vld [vmem:[#allocation9 + $0x7c] sm:$0xf]  ;;  %v997_v0 = vor.u32 %v1059_v60, %v996_v59  ;;  %v842_v1 = vld [vmem:[#allocation9 + $0x94] sm:$0xf0]  ;;  %v960_v2 = vld [vmem:[#allocation9 + $0x160] sm:$0xf] }
  0x34   :  { %673 = vmatpush.bf16.msra.mxu1 %v985_v55  ;;  %v989_v55 = vor.u32 %v1058_v51, %v988_v50  ;;  %v1044_v21 = vld [vmem:[#allocation9 + $0x140] sm:$0xf0]  ;;  %v1041_v22 = vld [vmem:[#allocation9 + $0x12c] sm:$0xf]  ;;  %v934_v23 = vld [vmem:[#allocation9 + $0x144] sm:$0xf0] }
  0x35   :  { %v937_v27 = vor.u32 %v1041_v22, %v934_v23  ;;  %v1005_v31 = vld [vmem:[#allocation9 + $0xc] sm:$0xf]  ;;  %v786_v32 = vld [vmem:[#allocation9 + $0x24] sm:$0xf0]  ;;  %v906_v40 = vld [vmem:[#allocation9 + $0x10c] sm:$0xf0] }
  0x36   :  { %v789_v36 = vor.u32 %v1005_v31, %v786_v32  ;;  %v1037_v37 = vld [vmem:[#allocation9 + $0x108] sm:$0xf0]  ;;  %v912_v41 = vld [vmem:[#allocation9 + $0xf8] sm:$0xf]  ;;  %v1027_v50 = vld [vmem:[#allocation9 + $0xbc] sm:$0xf] }
  0x37   :  { %v878_v51 = vld [vmem:[#allocation9 + $0xd4] sm:$0xf0]  ;;  %v848_v56 = vld [vmem:[#allocation9 + $0x80] sm:$0xf]  ;;  %v1020_v59 = vld [vmem:[#allocation9 + $0x84] sm:$0xf] }
  0x38   :  { %674 = vmatpush.bf16.msra.mxu1 %v957_v4  ;;  %v1051_v4 = vld [vmem:[#allocation9 + $0x178] sm:$0xf0]  ;;  %v850_v60 = vld [vmem:[#allocation9 + $0x9c] sm:$0xf0] }
  0x39   :  { %v1074_v32 = vld [vmem:[#allocation7] ss:$0 sm:$0xff] }
  0xa0   :  { %v159_v9 = vpop.f32.mrf.mxu1 }
  0xa1   :  { %v160_v10 = vadd.f32 %v1071_v8, %v159_v9  ;;  %v833_v8 = vor.u32 %v1021_v6, %v832_v5  ;;  %v834_v9 = vld [vmem:[#allocation9 + $0x8c] sm:$0xf0]  ;;  %v1048_v5 = vld [vmem:[#allocation9 + $0x164] sm:$0xf]  ;;  %v962_v6 = vld [vmem:[#allocation9 + $0x17c] sm:$0xf0] }
  0xa3   :  { %vm163_vm1 = vcmp.ge.f32.partialorder %v160_v10, 0.0  ;;  %v164_v11 = vmul.f32 0.2, %v160_v10  ;;  %639 = vmatpush.bf16.msra.mxu2 %v833_v8 }
  0xa5   :  { %v165_v12 = vsel %vm163_vm1, %v160_v10, %v164_v11  ;;  %v840_v10 = vld [vmem:[#allocation9 + $0x78] sm:$0xf]  ;;  %v1022_v11 = vld [vmem:[#allocation9 + $0x90] sm:$0xf0] }
  0xa6   :  { %v166_v13 = vpack.c.bf16 %v165_v12, %v165_v12  ;;  %v837_v12 = vor.u32 %v1018_v7, %v834_v9  ;;  %v961_v9 = vor.u32 %v1051_v4, %v960_v2  ;;  %v1016_v2 = vld [vmem:[#allocation9 + $0x60] sm:$0xf0]  ;;  %v1013_v4 = vld [vmem:[#allocation9 + $0x4c] sm:$0xf] }
  0xa7   :  { %640 = vmatpush.bf16.msra.mxu2 %v805_v24 }
  0xa8   :  { %v161_v14 = vpop.f32.mrf.mxu1  ;;  %773 = vmatmul.msk.bf16.vlgmr.msrb.gmra.mxu1 %vm203_vm2, %v166_v13  ;;  %v841_v13 = vor.u32 %v1022_v11, %v840_v10  ;;  %652 = vmatpush.bf16.msra.mxu3 %v837_v12  ;;  %v965_v10 = vor.u32 %v1048_v5, %v962_v6  ;;  %v968_v11 = vld [vmem:[#allocation9 + $0x168] sm:$0xf]  ;;  %v1052_v12 = vld [vmem:[#allocation9 + $0x180] sm:$0xf0]  ;;  %v828_v6 = vld [vmem:[#allocation9 + $0x50] sm:$0xf] }
  0xa9   :  { %v1040_v14 = vld [vmem:[#allocation9 + $0x124] sm:$0xf]  ;;  %v822_v5 = vld [vmem:[#allocation9 + $0x64] sm:$0xf0] }
  0xaa   :  { %v929_v19 = vor.u32 %v1040_v14, %v926_v15  ;;  %665 = vmatpush.bf16.msra.mxu0 %v841_v13  ;;  %v1012_v13 = vld [vmem:[#allocation9 + $0x44] sm:$0xf]  ;;  %v814_v14 = vld [vmem:[#allocation9 + $0x5c] sm:$0xf0] }
  0xab   :  { %641 = vmatpush.bf16.msra.mxu2 %v777_v38  ;;  %v1034_v38 = vld [vmem:[#allocation9 + $0xf4] sm:$0xf] }
  0xac   :  { %675 = vmatpush.bf16.msra.mxu1 %v929_v19  ;;  %653 = vmatpush.bf16.msra.mxu3 %v809_v29  ;;  %v932_v19 = vld [vmem:[#allocation9 + $0x128] sm:$0xf]  ;;  %v1045_v29 = vld [vmem:[#allocation9 + $0x148] sm:$0xf0] }
  0xad   :  { %v933_v26 = vor.u32 %v1044_v21, %v932_v19 }
  0xae   :  { %666 = vmatpush.bf16.msra.mxu0 %v813_v30 }
  0xaf   :  { %686 = vmatpush.bf16.msrb.mxu2 %v989_v55  ;;  %v1031_v55 = vld [vmem:[#allocation9 + $0xd8] sm:$0xf0] }
  0xb0   :  { %676 = vmatpush.bf16.msra.mxu1 %v901_v33  ;;  %654 = vmatpush.bf16.msra.mxu3 %v781_v44  ;;  %v904_v33 = vld [vmem:[#allocation9 + $0xf0] sm:$0xf]  ;;  %v909_v44 = vor.u32 %v1034_v38, %v906_v40  ;;  %v330_v38 = vld [vmem:[#allocation10] sm:$0xff] }
  0xb1   :  { %v905_v39 = vor.u32 %v1037_v37, %v904_v33 }
  0xb2   :  { %667 = vmatpush.bf16.msra.mxu0 %v785_v48  ;;  %v1030_v48 = vld [vmem:[#allocation9 + $0xd0] sm:$0xf0] }
  0xb3   :  { %687 = vmatpush.bf16.msrb.mxu2 %v961_v9  ;;  %v825_v9 = vor.u32 %v1013_v4, %v822_v5 }
  0xb4   :  { %677 = vmatpush.bf16.msra.mxu1 %v873_v54  ;;  %699 = vmatpush.bf16.msrb.mxu3 %v993_v58  ;;  %v881_v54 = vor.u32 %v1027_v50, %v878_v51  ;;  %v1023_v58 = vld [vmem:[#allocation9 + $0x98] sm:$0xf0] }
  0xb6   :  { %712 = vmatpush.bf16.msrb.mxu0 %v997_v0  ;;  %v853_v0 = vor.u32 %v1020_v59, %v850_v60  ;;  %v336_v60 = vperm.slane %v330_v38, 4 }
  0xb7   :  { %688 = vmatpush.bf16.msrb.mxu2 %v933_v26 }
  0xb8   :  { %700 = vmatpush.bf16.msrb.mxu3 %v965_v10  ;;  %v792_v10 = vld [vmem:[#allocation9 + $0x10] sm:$0xf] }
  0xbb   :  { %689 = vmatpush.bf16.msrb.mxu2 %v905_v39 }
  0xbc   :  { %701 = vmatpush.bf16.msrb.mxu3 %v937_v27 }
  0xc0   :  { %702 = vmatpush.bf16.msrb.mxu3 %v909_v44  ;;  %v333_v44 = vperm.slane %v330_v38, 1 }
  0xc4   :  { %703 = vmatpush.bf16.msrb.mxu3 %v881_v54 }
  0xc8   :  { %704 = vmatpush.bf16.msrb.mxu3 %v853_v0 }
  0xcc   :  { %705 = vmatpush.bf16.msrb.mxu3 %v825_v9 }
 0x125   :  { %v216_v18 = vpop.f32.mrf.mxu1 }
 0x126   :  { %v1335_v20 = vadd.f32 %v1072_v3, %v216_v18  ;;  %v845_v3 = vor.u32 %v1019_v61, %v842_v1  ;;  %v817_v18 = vor.u32 %v1012_v13, %v814_v14  ;;  %v849_v61 = vor.u32 %v1023_v58, %v848_v56  ;;  %v820_v1 = vld [vmem:[#allocation9 + $0x48] sm:$0xf]  ;;  %v1006_v14 = vld [vmem:[#allocation9 + $0x14] sm:$0xf] }
 0x128   :  { %v220_v28 = vmul.f32 %v747_v17, %v1335_v20  ;;  %678 = vmatpush.bf16.msra.mxu1 %v845_v3  ;;  %v969_v17 = vor.u32 %v1052_v12, %v968_v11  ;;  %v1009_v11 = vld [vmem:[#allocation9 + $0x28] sm:$0xf0] }
 0x129   :  { %v793_v19 = vor.u32 %v1009_v11, %v792_v10 }
 0x12a   :  { %v221_v34 = vrot.slane %v220_v28, 4  ;;  %v228_v35 = vmul.f32 %v220_v28, %v1335_v20  ;;  %713 = vmatpush.bf16.msrb.mxu0 %v969_v17  ;;  %v800_v17 = vld [vmem:[#allocation9 + $0x18] sm:$0xf] }
 0x12c   :  { %v222_v42 = vadd.f32 %v221_v34, %v220_v28  ;;  %v229_v43 = vrot.slane %v228_v35, 4  ;;  %v940_v28 = vld [vmem:[#allocation9 + $0x130] sm:$0xf]  ;;  %679 = vmatpush.bf16.msra.mxu1 %v817_v18  ;;  %v1010_v18 = vld [vmem:[#allocation9 + $0x30] sm:$0xf0] }
 0x12d   :  { %v218_v47 = vpop.f32.mrf.mxu1  ;;  %v941_v30 = vor.u32 %v1045_v29, %v940_v28  ;;  %v801_v23 = vor.u32 %v1010_v18, %v800_v17  ;;  %v1073_v29 = vld [vmem:[#allocation6] ss:$0 sm:$0xff] }
 0x12e   :  { %v223_v52 = vrot.slane %v222_v42, 2  ;;  %v230_v53 = vadd.f32 %v229_v43, %v228_v35  ;;  %v876_v47 = vld [vmem:[#allocation9 + $0xb8] sm:$0xf] }
 0x12f   :  { %714 = vmatpush.bf16.msrb.mxu0 %v941_v30  ;;  %v877_v49 = vor.u32 %v1030_v48, %v876_v47 }
 0x130   :  { %v224_v62 = vadd.f32 %v223_v52, %v222_v42  ;;  %v231_v63 = vrot.slane %v230_v53, 2  ;;  %v1038_v42 = vld [vmem:[#allocation9 + $0x110] sm:$0xf0]  ;;  %680 = vmatpush.bf16.msra.mxu1 %v789_v36  ;;  %v884_v52 = vld [vmem:[#allocation9 + $0xc0] sm:$0xf] }
 0x131   :  { %v913_v45 = vor.u32 %v1038_v42, %v912_v41  ;;  %v885_v57 = vor.u32 %v1031_v55, %v884_v52  ;;  %690 = vmatpush.bf16.msrb.mxu2 %v877_v49  ;;  %v338_v55 = vperm.slane %v330_v38, 6 }
 0x132   :  { %v225_v7 = vrot.slane %v224_v62, 1  ;;  %v232_v8 = vadd.f32 %v231_v63, %v230_v53  ;;  %v1024_v63 = vld [vmem:[#allocation9 + $0xa0] sm:$0xf0] }
 0x133   :  { %715 = vmatpush.bf16.msrb.mxu0 %v913_v45 }
 0x134   :  { %v226_v15 = vadd.f32 %v225_v7, %v224_v62  ;;  %v233_v16 = vrot.slane %v232_v8, 1  ;;  %v856_v62 = vld [vmem:[#allocation9 + $0x88] sm:$0xf]  ;;  %v1017_v7 = vld [vmem:[#allocation9 + $0x68] sm:$0xf0] }
 0x135   :  { %v857_v3 = vor.u32 %v1024_v63, %v856_v62  ;;  %691 = vmatpush.bf16.msrb.mxu2 %v849_v61  ;;  %v829_v13 = vor.u32 %v1017_v7, %v828_v6  ;;  %v337_v61 = vperm.slane %v330_v38, 5 }
 0x136   :  { %v1339_v24 = vmul.f32 0.5, %v226_v15  ;;  %v234_v25 = vadd.f32 %v233_v16, %v232_v8  ;;  %v821_v8 = vor.u32 %v1016_v2, %v820_v1  ;;  %v794_v15 = vld [vmem:[#allocation9 + $0x2c] sm:$0xf0] }
 0x137   :  { %716 = vmatpush.bf16.msrb.mxu0 %v885_v57  ;;  %v797_v22 = vor.u32 %v1006_v14, %v794_v15 }
 0x138   :  { %v235_v34 = vmul.f32 0.5, %v234_v25  ;;  %v236_v35 = vmul.f32 %v1339_v24, %v1339_v24  ;;  %v239_v28 = vsub.f32 %v1335_v20, %v1339_v24  ;;  %v334_v20 = vperm.slane %v330_v38, 2 }
 0x139   :  { %692 = vmatpush.bf16.msrb.mxu2 %v821_v8  ;;  %706 = vmatpush.bf16.msrb.mxu3 %v797_v22  ;;  %v335_v24 = vperm.slane %v330_v38, 3 }
 0x13a   :  { %v237_v43 = vsub.f32 %v235_v34, %v236_v35 }
 0x13b   :  { %717 = vmatpush.bf16.msrb.mxu0 %v857_v3 }
 0x13c   :  { %v238_v46 = vmax.f32 %v237_v43, 0.0  ;;  %v332_v43 = vperm.slane %v330_v38, 0 }
 0x13d   :  { %693 = vmatpush.bf16.msrb.mxu2 %v793_v19 }
 0x13e   :  { %v240_v53 = vadd.f32 1e-05, %v238_v46 }
 0x13f   :  { %718 = vmatpush.bf16.msrb.mxu0 %v829_v13 }
 0x140   :  { %1075 = vrsqrt.f32 %v240_v53  ;;  %vm247_vm5 = vweird.f32 %v240_v53 }
 0x143   :  { %719 = vmatpush.bf16.msrb.mxu0 %v801_v23 }
 0x146   :  { %v1076_v12 = vpop.eup %1075 }
 0x147   :  { %v242_v16 = vmul.f32 %v1076_v12, %v240_v53  ;;  %vm248_vm4 = vweird.f32 %v1076_v12 }
 0x148   :  { %vm249_vm6 = vmor %vm247_vm5, %vm248_vm4 }
 0x149   :  { %v243_v21 = vmul.f32 %v1076_v12, %v242_v16 }
 0x14b   :  { %v244_v25 = vmul.f32 0.5, %v243_v21 }
 0x14d   :  { %v245_v26 = vsub.f32 1.5, %v244_v25 }
 0x14f   :  { %v246_v27 = vmul.f32 %v1076_v12, %v245_v26 }
 0x151   :  { %v250_v30 = vsel %vm249_vm6, %v1076_v12, %v246_v27 }
 0x152   :  { %v251_v31 = vmul.f32 %v250_v30, %v239_v28 }
 0x154   :  { %v256_v33 = vmul.f32 %v1073_v29, %v251_v31 }
 0x156   :  { %v261_v34 = vadd.f32 %v1074_v32, %v256_v33 }
 0x158   :  { %vm262_vm7 = vcmp.ge.f32.partialorder %v261_v34, 0.0  ;;  %v263_v35 = vmul.f32 0.2, %v261_v34 }
 0x15a   :  { %v264_v36 = vsel %vm262_vm7, %v261_v34, %v263_v35 }
 0x15b   :  { %v265_v37 = vpack.c.bf16 %v264_v36, %v264_v36 }
 0x15d   :  { %642 = vmatmul.bf16.vlgmr.msra.gmra.mxu2 %v265_v37  ;;  %655 = vmatmul.bf16.vlgmr.msra.gmra.mxu3 %v265_v37 }
 0x15e   :  { %668 = vmatmul.bf16.vlgmr.msra.gmra.mxu0 %v265_v37  ;;  %681 = vmatmul.bf16.vlgmr.msra.gmra.mxu1 %v265_v37 }
 0x16d   :  { %694 = vmatmul.bf16.vlgmr.msrb.gmra.mxu2 %v265_v37  ;;  %707 = vmatmul.bf16.vlgmr.msrb.gmra.mxu3 %v265_v37 }
 0x16e   :  { %720 = vmatmul.bf16.vlgmr.msrb.gmra.mxu0 %v265_v37 }
 0x1db   :  { %v669_v39 = vpop.f32.mrf.mxu0  ;;  %v682_v40 = vpop.f32.mrf.mxu1 }
 0x1dc   :  { %v670_v41 = vadd.f32 %v669_v39, %v334_v20  ;;  %v683_v42 = vadd.f32 %v682_v40, %v335_v24 }
 0x1de   :  { %1077 = vtanh.f32 %v670_v41 }
 0x1df   :  { %1079 = vtanh.f32 %v683_v42 }
 0x1e0   :  { %v643_v45 = vpop.f32.mrf.mxu2  ;;  %v656_v46 = vpop.f32.mrf.mxu3 }
 0x1e1   :  { %v644_v47 = vadd.f32 %v643_v45, %v332_v43  ;;  %v657_v48 = vadd.f32 %v656_v46, %v333_v44 }
 0x1e3   :  { %1081 = vtanh.f32 %v644_v47  ;;  %v671_v49 = vpop.f32.mrf.mxu0  ;;  %v684_v50 = vpop.f32.mrf.mxu1 }
 0x1e4   :  { %v1078_v51 = vpop.eup %1077  ;;  %1083 = vtanh.f32 %v657_v48 }
 0x1e5   :  { %v1080_v52 = vpop.eup %1079  ;;  %734 = vst [vmem:[%s1375_s9 + $0x10] sm:$0xff] %v1078_v51 }
 0x1e6   :  { %735 = vst [vmem:[%s1375_s9 + $0x18] sm:$0xff] %v1080_v52 }
 0x1e8   :  { %v645_v53 = vpop.f32.mrf.mxu2  ;;  %v658_v54 = vpop.f32.mrf.mxu3 }
 0x1e9   :  { %v1082_v56 = vpop.eup %1081 }
 0x1ea   :  { %v1084_v57 = vpop.eup %1083  ;;  %732 = vst [vmem:[%s1375_s9] sm:$0xff] %v1082_v56 }
 0x1eb   :  { %733 = vst [vmem:[%s1375_s9 + $0x8] sm:$0xff] %v1084_v57  ;;  %v721_v58 = vpop.f32.mrf.mxu0 }
 0x1ec   :  { %v722_v59 = vadd.f32 %v721_v58, %v338_v55 }
 0x1ee   :  { %1085 = vtanh.f32 %v722_v59 }
 0x1f0   :  { %v695_v62 = vpop.f32.mrf.mxu2  ;;  %v708_v63 = vpop.f32.mrf.mxu3 }
 0x1f1   :  { %v696_v0 = vadd.f32 %v695_v62, %v336_v60  ;;  %v709_v1 = vadd.f32 %v708_v63, %v337_v61 }
 0x1f3   :  { %1087 = vtanh.f32 %v696_v0  ;;  %v723_v2 = vpop.f32.mrf.mxu0 }
 0x1f4   :  { %v1086_v3 = vpop.eup %1085  ;;  %1089 = vtanh.f32 %v709_v1 }
 0x1f5   :  { %738 = vst [vmem:[%s1375_s9 + $0x30] sm:$0xff] %v1086_v3 }
 0x1f8   :  { %v697_v4 = vpop.f32.mrf.mxu2  ;;  %v710_v5 = vpop.f32.mrf.mxu3 }
 0x1f9   :  { %v1088_v6 = vpop.eup %1087 }
 0x1fa   :  { %v1090_v7 = vpop.eup %1089  ;;  %736 = vst [vmem:[%s1375_s9 + $0x20] sm:$0xff] %v1088_v6 }
 0x1fb   :  { %737 = vst [vmem:[%s1375_s9 + $0x28] sm:$0xff] %v1090_v7 }
 0x1fc   :  { %743 = vsyncpa [#allocation3], 1 }
 0x1fd   :  { %744 = vsyncpa [#allocation5], 1 }
 0x1fe   :  { %745 = vsyncpa [#allocation8], 1 }
 0x1ff   :  { %746 = vsyncpa [#allocation11], 1 }

</bundles_post_ra>
